<compile_context>
chip_gen: v7x
topology: tpu7x:2x2x1
jax: 0.10.0
libtpu: 0.0.40
codegen_flags: <defaults>
</compile_context>

<pallas_src>
import functools
import math

import jax
import jax.numpy as jnp
from jax.experimental import pallas as pl
from jax.experimental.pallas import tpu as pltpu

_BN_EPS = 1e-5
_LANE = 128       # vreg lane width -> feature padding
_SUBLANE = 16     # bf16 sublane packing -> batch padding


def _round_up(n, m):
    return ((n + m - 1) // m) * m


def _full_spec(shape):
    # single-invocation (no grid) BlockSpec covering the whole array in VMEM
    return pl.BlockSpec(shape, lambda: (0,) * len(shape))


def _fused_mlp_kernel(n_hidden_layers, n_valid_rows, *refs):
    """refs = (x_ref, [w_ref, packed_ref] * n_hidden, w_out_ref, b_out_ref, o_ref).

    x_ref:      [b_pad, in_pad]    bf16  (zero-padded rows/cols)
    w_ref:      [in_pad, out_pad]  bf16  (pre-transposed, zero-padded)
    packed_ref: [3, out_pad]       f32   rows = (bias, gamma, beta)
    """
    x_ref = refs[0]
    o_ref = refs[-1]
    layer_refs = refs[1:-1]

    h = x_ref[...]                                   # bf16 [b_pad, in_pad]
    b_pad = h.shape[0]

    # mask for padded batch rows (must not pollute BN statistics)
    row_ids = jax.lax.broadcasted_iota(jnp.int32, (b_pad, 1), 0)
    valid = row_ids < n_valid_rows
    inv_n = 1.0 / float(n_valid_rows)

    for li in range(n_hidden_layers):
        w_ref = layer_refs[2 * li]
        p_ref = layer_refs[2 * li + 1]
        p = p_ref[...]                               # [3, out_pad] f32

        # Linear: bf16 MXU matmul, f32 accumulation; bias/ReLU/BN stay f32.
        z = jnp.dot(h.astype(jnp.bfloat16), w_ref[...],
                    preferred_element_type=jnp.float32)
        z = z + p[0:1, :]                            # bias
        z = jnp.maximum(z, 0.0)                      # ReLU

        # BatchNorm1d (training mode, biased variance), one-pass masked stats,
        # affine folded into a single per-feature scale/shift.
        zm = jnp.where(valid, z, 0.0)
        mean = jnp.sum(zm, axis=0, keepdims=True) * inv_n
        ex2 = jnp.sum(zm * zm, axis=0, keepdims=True) * inv_n
        var = jnp.maximum(ex2 - mean * mean, 0.0)
        rstd = jax.lax.rsqrt(var + _BN_EPS)          # EUP
        scale = p[1:2, :] * rstd                     # gamma * rstd   [1, out_pad]
        shift = p[2:3, :] - mean * scale             # beta - mean*scale
        h = z * scale + shift                        # 2 full-tile VPU passes
        # NOTE: no trailing where(valid, ...) — stats are masked via zm and
        # padded rows never leak into valid rows through row-wise matmuls.

    w_out_ref = layer_refs[-2]
    b_out_ref = layer_refs[-1]
    out = jnp.dot(h.astype(jnp.bfloat16), w_out_ref[...],
                  preferred_element_type=jnp.float32) + b_out_ref[...]
    o_ref[...] = out.astype(o_ref.dtype)


# ---------------------------------------------------------------------------
# parameter handling
# ---------------------------------------------------------------------------

def init_mlp_params(key, n_inputs, n_hidden, n_classes):
    """PyTorch-default-style init (Linear U(-1/sqrt(fan_in), +); BN weight=1, bias=0),
    stored in PyTorch layout ([out, in]) for the reference path."""
    params = {"hidden": [], "out": None}
    in_f = n_inputs
    for h in n_hidden:
        key, kw, kb = jax.random.split(key, 3)
        bound = 1.0 / math.sqrt(in_f)
        w = jax.random.uniform(kw, (h, in_f), jnp.float32, -bound, bound)
        b = jax.random.uniform(kb, (h,), jnp.float32, -bound, bound)
        gamma = jnp.ones((h,), jnp.float32)
        beta = jnp.zeros((h,), jnp.float32)
        params["hidden"].append((w, b, gamma, beta))
        in_f = h
    key, kw, kb = jax.random.split(key, 3)
    bound = 1.0 / math.sqrt(in_f)
    w = jax.random.uniform(kw, (n_classes, in_f), jnp.float32, -bound, bound)
    b = jax.random.uniform(kb, (n_classes,), jnp.float32, -bound, bound)
    params["out"] = (w, b)
    return params


def prepare_kernel_params(params):
    """One-time (outside jit) conversion to kernel layout:
    transpose to [in, out], pad features to 128, cast weights to bf16,
    pack (bias, gamma, beta) into a single [3, out_pad] f32 array."""
    hidden = []
    for (w, b, gamma, beta) in params["hidden"]:
        out_f, in_f = w.shape
        in_p, out_p = _round_up(in_f, _LANE), _round_up(out_f, _LANE)
        wt = jnp.zeros((in_p, out_p), jnp.bfloat16)
        wt = wt.at[:in_f, :out_f].set(jnp.transpose(w).astype(jnp.bfloat16))
        pk = jnp.zeros((3, out_p), jnp.float32)
        pk = pk.at[0, :out_f].set(b)
        pk = pk.at[1, :out_f].set(gamma)
        pk = pk.at[2, :out_f].set(beta)
        hidden.append((wt, pk))
    w, b = params["out"]
    out_f, in_f = w.shape
    in_p, out_p = _round_up(in_f, _LANE), _round_up(out_f, _LANE)
    wt = jnp.zeros((in_p, out_p), jnp.bfloat16)
    wt = wt.at[:in_f, :out_f].set(jnp.transpose(w).astype(jnp.bfloat16))
    bp = jnp.zeros((1, out_p), jnp.float32).at[0, :out_f].set(b)
    return {"hidden": hidden, "out": (wt, bp)}


# ---------------------------------------------------------------------------
# forward
# ---------------------------------------------------------------------------

def _vmem_limit_bytes(inputs, out_shape):
    """Size the scoped VMEM limit from the actual resident footprint:
    all inputs + output + ~3 full-size f32 temporaries, +30% headroom,
    clamped to [32 MiB, 64 MiB] (64 MiB = v7x physical VMEM)."""
    resident = sum(int(a.size) * a.dtype.itemsize for a in inputs)
    resident += int(out_shape[0] * out_shape[1]) * 4          # f32 output
    max_feat = max(a.shape[-1] for a in inputs)
    resident += 3 * int(out_shape[0]) * int(max_feat) * 4     # z / zm / h temps
    limit = int(1.3 * resident)
    return max(32 << 20, min(64 << 20, limit))


def mlp_forward(kparams, x, *, n_classes):
    batch, in_f = x.shape
    b_pad = _round_up(batch, _SUBLANE)

    first_w = kparams["hidden"][0][0] if kparams["hidden"] else kparams["out"][0]
    in_pad = first_w.shape[0]
    # pad AND pre-cast x to bf16 (half the DMA, no in-kernel cast pass)
    x_p = jnp.zeros((b_pad, in_pad), jnp.bfloat16)
    x_p = x_p.at[:batch, :in_f].set(x.astype(jnp.bfloat16))

    inputs = [x_p]
    in_specs = [_full_spec(x_p.shape)]
    for (wt, pk) in kparams["hidden"]:
        inputs += [wt, pk]
        in_specs += [_full_spec(wt.shape), _full_spec(pk.shape)]
    w_out, b_out = kparams["out"]
    inputs += [w_out, b_out]
    in_specs += [_full_spec(w_out.shape), _full_spec(b_out.shape)]
    out_pad = w_out.shape[1]

    kernel = functools.partial(_fused_mlp_kernel, len(kparams["hidden"]), batch)
    out_p = pl.pallas_call(
        kernel,
        out_shape=jax.ShapeDtypeStruct((b_pad, out_pad), jnp.float32),
        in_specs=in_specs,
        out_specs=_full_spec((b_pad, out_pad)),
        compiler_params=pltpu.CompilerParams(
            vmem_limit_bytes=_vmem_limit_bytes(inputs, (b_pad, out_pad))),
    )(*inputs)
    # lane-dense output sliced outside the kernel (keep: sub-128 stores are slow)
    return out_p[:batch, :n_classes]


# ---------------------------------------------------------------------------
# references
# ---------------------------------------------------------------------------

def _reference_forward_f32(params, x):
    """Pure-f32 torch-semantics reference (loose sanity check)."""
    for (w, b, gamma, beta) in params["hidden"]:
        h = x @ w.T + b
        h = jnp.maximum(h, 0.0)
        mean = jnp.mean(h, axis=0, keepdims=True)
        var = jnp.mean((h - mean) ** 2, axis=0, keepdims=True)
        x = gamma * (h - mean) / jnp.sqrt(var + _BN_EPS) + beta
    w, b = params["out"]
    return x @ w.T + b


def _reference_forward_matched(params, x):
    """Reference with the SAME bf16-matmul / f32-everything-else recipe as the kernel."""
    n = x.shape[0]
    x = x.astype(jnp.bfloat16)
    for (w, b, gamma, beta) in params["hidden"]:
        h = jnp.dot(x.astype(jnp.bfloat16), jnp.transpose(w).astype(jnp.bfloat16),
                    preferred_element_type=jnp.float32) + b
        h = jnp.maximum(h, 0.0)
        mean = jnp.sum(h, axis=0, keepdims=True) / n
        ex2 = jnp.sum(h * h, axis=0, keepdims=True) / n
        var = jnp.maximum(ex2 - mean * mean, 0.0)
        rstd = jax.lax.rsqrt(var + _BN_EPS)
        scale = gamma * rstd
        shift = beta - mean * scale
        x = h * scale + shift
    w, b = params["out"]
    return jnp.dot(x.astype(jnp.bfloat16), jnp.transpose(w).astype(jnp.bfloat16),
                   preferred_element_type=jnp.float32) + b


# ---------------------------------------------------------------------------
if __name__ == "__main__":
    key = jax.random.PRNGKey(0)
    batch, n_inputs, n_hidden, n_classes = 8, 32, [64, 32], 10

    key, kx, kp = jax.random.split(key, 3)
    x = jax.random.normal(kx, (batch, n_inputs), jnp.float32)
    params = init_mlp_params(kp, n_inputs, n_hidden, n_classes)

    # one-time layout prep (pre-transpose / pad / bf16 / pack) outside jit
    kparams = prepare_kernel_params(params)

    forward = jax.jit(functools.partial(mlp_forward, n_classes=n_classes))
    out = forward(kparams, x)
    out = jax.block_until_ready(out)
    assert out.shape == (batch, n_classes)

    # tight check vs a reference using the identical bf16-matmul recipe
    ref_m = _reference_forward_matched(params, x)
    assert jnp.allclose(out, ref_m, atol=5e-3, rtol=5e-3), "mismatch vs matched reference"

    # loose sanity check vs the pure-f32 PyTorch-semantics reference
    ref_f32 = _reference_forward_f32(params, x)
    assert jnp.allclose(out, ref_f32, atol=0.5, rtol=0.5), "gross mismatch vs f32 reference"

    print("KERNEL_OK")
</pallas_src>

<mosaic_0001>
module attributes {stable_mosaic.version = 11 : i64} {
  func.func @_fused_mlp_kernel(%arg0: memref<16x128xbf16, #tpu.memory_space<vmem>>, %arg1: memref<128x128xbf16, #tpu.memory_space<vmem>>, %arg2: memref<3x128xf32, #tpu.memory_space<vmem>>, %arg3: memref<128x128xbf16, #tpu.memory_space<vmem>>, %arg4: memref<3x128xf32, #tpu.memory_space<vmem>>, %arg5: memref<128x128xbf16, #tpu.memory_space<vmem>>, %arg6: memref<1x128xf32, #tpu.memory_space<vmem>>, %arg7: memref<16x128xf32, #tpu.memory_space<vmem>>) attributes {dimension_semantics = [], scalar_prefetch = 0 : i64, scratch_operands = 0 : i64, tpu.core_type = #tpu.core_type<tc>} {
    %c0 = arith.constant 0 : index
    %c0_0 = arith.constant 0 : index
    %0 = vector.load %arg0[%c0, %c0_0] : memref<16x128xbf16, #tpu.memory_space<vmem>>, vector<16x128xbf16>
    %1 = tpu.iota {dimensions = array<i32: 0>} : vector<16x1xi32>
    %c8_i32 = arith.constant 8 : i32
    %2 = vector.broadcast %c8_i32 : i32 to vector<16x1xi32>
    %3 = arith.cmpi slt, %1, %2 : vector<16x1xi32>
    %c0_1 = arith.constant 0 : index
    %c0_2 = arith.constant 0 : index
    %4 = vector.load %arg2[%c0_1, %c0_2] : memref<3x128xf32, #tpu.memory_space<vmem>>, vector<3x128xf32>
    %c0_3 = arith.constant 0 : index
    %c0_4 = arith.constant 0 : index
    %5 = vector.load %arg1[%c0_3, %c0_4] : memref<128x128xbf16, #tpu.memory_space<vmem>>, vector<128x128xbf16>
    %cst = arith.constant dense<0.000000e+00> : vector<16x128xf32>
    %6 = tpu.matmul %0, %5, %cst {dimension_numbers = #tpu.dot_dimension_numbers<[1], [0], [0], [1], [0, 0, 1, 1], [], []>} : vector<16x128xbf16>, vector<128x128xbf16>, vector<16x128xf32> -> vector<16x128xf32>
    %7 = vector.extract_strided_slice %4 {offsets = [0, 0], sizes = [1, 128], strides = [1, 1]} : vector<3x128xf32> to vector<1x128xf32>
    %8 = vector.broadcast %7 : vector<1x128xf32> to vector<16x128xf32>
    %9 = arith.addf %6, %8 : vector<16x128xf32>
    %cst_5 = arith.constant 0.000000e+00 : f32
    %10 = vector.broadcast %cst_5 : f32 to vector<16x128xf32>
    %11 = arith.maximumf %9, %10 : vector<16x128xf32>
    %cst_6 = arith.constant 0.000000e+00 : f32
    %12 = vector.shape_cast %3 : vector<16x1xi1> to vector<16x1xi1>
    %13 = vector.broadcast %12 : vector<16x1xi1> to vector<16x128xi1>
    %14 = vector.broadcast %cst_6 : f32 to vector<16x128xf32>
    %15 = arith.select %13, %11, %14 : vector<16x128xi1>, vector<16x128xf32>
    %cst_7 = arith.constant dense<0.000000e+00> : vector<128xf32>
    %16 = vector.multi_reduction <add>, %15, %cst_7 [0] : vector<16x128xf32> to vector<128xf32>
    %17 = vector.shape_cast %16 : vector<128xf32> to vector<1x128xf32>
    %cst_8 = arith.constant 1.250000e-01 : f32
    %18 = vector.broadcast %cst_8 : f32 to vector<1x128xf32>
    %19 = arith.mulf %17, %18 : vector<1x128xf32>
    %20 = arith.mulf %15, %15 : vector<16x128xf32>
    %cst_9 = arith.constant dense<0.000000e+00> : vector<128xf32>
    %21 = vector.multi_reduction <add>, %20, %cst_9 [0] : vector<16x128xf32> to vector<128xf32>
    %22 = vector.shape_cast %21 : vector<128xf32> to vector<1x128xf32>
    %cst_10 = arith.constant 1.250000e-01 : f32
    %23 = vector.broadcast %cst_10 : f32 to vector<1x128xf32>
    %24 = arith.mulf %22, %23 : vector<1x128xf32>
    %25 = arith.mulf %19, %19 : vector<1x128xf32>
    %26 = arith.subf %24, %25 : vector<1x128xf32>
    %cst_11 = arith.constant 0.000000e+00 : f32
    %27 = vector.broadcast %cst_11 : f32 to vector<1x128xf32>
    %28 = arith.maximumf %26, %27 : vector<1x128xf32>
    %cst_12 = arith.constant 9.99999974E-6 : f32
    %29 = vector.broadcast %cst_12 : f32 to vector<1x128xf32>
    %30 = arith.addf %28, %29 : vector<1x128xf32>
    %31 = math.rsqrt %30 : vector<1x128xf32>
    %32 = vector.extract_strided_slice %4 {offsets = [1, 0], sizes = [1, 128], strides = [1, 1]} : vector<3x128xf32> to vector<1x128xf32>
    %33 = arith.mulf %32, %31 : vector<1x128xf32>
    %34 = vector.extract_strided_slice %4 {offsets = [2, 0], sizes = [1, 128], strides = [1, 1]} : vector<3x128xf32> to vector<1x128xf32>
    %35 = arith.mulf %19, %33 : vector<1x128xf32>
    %36 = arith.subf %34, %35 : vector<1x128xf32>
    %37 = vector.broadcast %33 : vector<1x128xf32> to vector<16x128xf32>
    %38 = arith.mulf %11, %37 : vector<16x128xf32>
    %39 = vector.broadcast %36 : vector<1x128xf32> to vector<16x128xf32>
    %40 = arith.addf %38, %39 : vector<16x128xf32>
    %c0_13 = arith.constant 0 : index
    %c0_14 = arith.constant 0 : index
    %41 = vector.load %arg4[%c0_13, %c0_14] : memref<3x128xf32, #tpu.memory_space<vmem>>, vector<3x128xf32>
    %42 = arith.truncf %40 : vector<16x128xf32> to vector<16x128xbf16>
    %c0_15 = arith.constant 0 : index
    %c0_16 = arith.constant 0 : index
    %43 = vector.load %arg3[%c0_15, %c0_16] : memref<128x128xbf16, #tpu.memory_space<vmem>>, vector<128x128xbf16>
    %cst_17 = arith.constant dense<0.000000e+00> : vector<16x128xf32>
    %44 = tpu.matmul %42, %43, %cst_17 {dimension_numbers = #tpu.dot_dimension_numbers<[1], [0], [0], [1], [0, 0, 1, 1], [], []>} : vector<16x128xbf16>, vector<128x128xbf16>, vector<16x128xf32> -> vector<16x128xf32>
    %45 = vector.extract_strided_slice %41 {offsets = [0, 0], sizes = [1, 128], strides = [1, 1]} : vector<3x128xf32> to vector<1x128xf32>
    %46 = vector.broadcast %45 : vector<1x128xf32> to vector<16x128xf32>
    %47 = arith.addf %44, %46 : vector<16x128xf32>
    %cst_18 = arith.constant 0.000000e+00 : f32
    %48 = vector.broadcast %cst_18 : f32 to vector<16x128xf32>
    %49 = arith.maximumf %47, %48 : vector<16x128xf32>
    %cst_19 = arith.constant 0.000000e+00 : f32
    %50 = vector.shape_cast %3 : vector<16x1xi1> to vector<16x1xi1>
    %51 = vector.broadcast %50 : vector<16x1xi1> to vector<16x128xi1>
    %52 = vector.broadcast %cst_19 : f32 to vector<16x128xf32>
    %53 = arith.select %51, %49, %52 : vector<16x128xi1>, vector<16x128xf32>
    %cst_20 = arith.constant dense<0.000000e+00> : vector<128xf32>
    %54 = vector.multi_reduction <add>, %53, %cst_20 [0] : vector<16x128xf32> to vector<128xf32>
    %55 = vector.shape_cast %54 : vector<128xf32> to vector<1x128xf32>
    %cst_21 = arith.constant 1.250000e-01 : f32
    %56 = vector.broadcast %cst_21 : f32 to vector<1x128xf32>
    %57 = arith.mulf %55, %56 : vector<1x128xf32>
    %58 = arith.mulf %53, %53 : vector<16x128xf32>
    %cst_22 = arith.constant dense<0.000000e+00> : vector<128xf32>
    %59 = vector.multi_reduction <add>, %58, %cst_22 [0] : vector<16x128xf32> to vector<128xf32>
    %60 = vector.shape_cast %59 : vector<128xf32> to vector<1x128xf32>
    %cst_23 = arith.constant 1.250000e-01 : f32
    %61 = vector.broadcast %cst_23 : f32 to vector<1x128xf32>
    %62 = arith.mulf %60, %61 : vector<1x128xf32>
    %63 = arith.mulf %57, %57 : vector<1x128xf32>
    %64 = arith.subf %62, %63 : vector<1x128xf32>
    %cst_24 = arith.constant 0.000000e+00 : f32
    %65 = vector.broadcast %cst_24 : f32 to vector<1x128xf32>
    %66 = arith.maximumf %64, %65 : vector<1x128xf32>
    %cst_25 = arith.constant 9.99999974E-6 : f32
    %67 = vector.broadcast %cst_25 : f32 to vector<1x128xf32>
    %68 = arith.addf %66, %67 : vector<1x128xf32>
    %69 = math.rsqrt %68 : vector<1x128xf32>
    %70 = vector.extract_strided_slice %41 {offsets = [1, 0], sizes = [1, 128], strides = [1, 1]} : vector<3x128xf32> to vector<1x128xf32>
    %71 = arith.mulf %70, %69 : vector<1x128xf32>
    %72 = vector.extract_strided_slice %41 {offsets = [2, 0], sizes = [1, 128], strides = [1, 1]} : vector<3x128xf32> to vector<1x128xf32>
    %73 = arith.mulf %57, %71 : vector<1x128xf32>
    %74 = arith.subf %72, %73 : vector<1x128xf32>
    %75 = vector.broadcast %71 : vector<1x128xf32> to vector<16x128xf32>
    %76 = arith.mulf %49, %75 : vector<16x128xf32>
    %77 = vector.broadcast %74 : vector<1x128xf32> to vector<16x128xf32>
    %78 = arith.addf %76, %77 : vector<16x128xf32>
    %79 = arith.truncf %78 : vector<16x128xf32> to vector<16x128xbf16>
    %c0_26 = arith.constant 0 : index
    %c0_27 = arith.constant 0 : index
    %80 = vector.load %arg5[%c0_26, %c0_27] : memref<128x128xbf16, #tpu.memory_space<vmem>>, vector<128x128xbf16>
    %cst_28 = arith.constant dense<0.000000e+00> : vector<16x128xf32>
    %81 = tpu.matmul %79, %80, %cst_28 {dimension_numbers = #tpu.dot_dimension_numbers<[1], [0], [0], [1], [0, 0, 1, 1], [], []>} : vector<16x128xbf16>, vector<128x128xbf16>, vector<16x128xf32> -> vector<16x128xf32>
    %c0_29 = arith.constant 0 : index
    %c0_30 = arith.constant 0 : index
    %82 = vector.load %arg6[%c0_29, %c0_30] : memref<1x128xf32, #tpu.memory_space<vmem>>, vector<1x128xf32>
    %83 = vector.broadcast %82 : vector<1x128xf32> to vector<16x128xf32>
    %84 = arith.addf %81, %83 : vector<16x128xf32>
    %c0_31 = arith.constant 0 : index
    %c0_32 = arith.constant 0 : index
    %85 = vector.load %arg7[%c0_31, %c0_32] : memref<16x128xf32, #tpu.memory_space<vmem>>, vector<16x128xf32>
    tpu.vector_store %arg7[%c0_31, %c0_32], %84 {strides = array<i32>} : memref<16x128xf32, #tpu.memory_space<vmem>>, vector<16x128xf32>,
    return
  }
}

</mosaic_0001>

<bundles_post_ra>
// kernel: mlp_forward.1
= control target key start
LH: loop header
LB: loop body
LE: loop exit
PB: predicated region body
PF: predicated region fallthrough
CT: control target
= control target key end

     0   :  { %12 = vsyncpa [#allocation3], 0  ;;  %s900_s0 = inlined_call_operand.vmem [shape: bf16[16,128], index: 0, kind: input, shape index: {}]   ;;  %s901_s1 = inlined_call_operand.hbm [shape: bf16[128,128], index: 1, kind: input, shape index: {}]   ;;  %s902_s2 = inlined_call_operand.vmem [shape: f32[3,128], index: 2, kind: input, shape index: {}]   ;;  %s903_s3 = inlined_call_operand.hbm [shape: bf16[128,128], index: 3, kind: input, shape index: {}]   ;;  %s904_s4 = inlined_call_operand.vmem [shape: f32[3,128], index: 4, kind: input, shape index: {}]   ;;  %s905_s5 = inlined_call_operand.hbm [shape: bf16[128,128], index: 5, kind: input, shape index: {}]   ;;  %s906_s6 = inlined_call_operand.vmem [shape: f32[1,128], index: 6, kind: input, shape index: {}]   ;;  %s907_s7 = inlined_call_operand.vmem [shape: f32[16,128], index: 7, kind: output, shape index: {}]  }
   0x1   :  { %13 = vsyncpa [#allocation5], 0  ;;  %s736_s24 = smov [#allocation4]   ;;  %s737_s26 = smov [#allocation2]  }
   0x2   :  { %s35_s25 = sshll.u32 %s736_s24, 4  ;;  %s21_s27 = sshll.u32 %s737_s26, 4  ;;  %s36_s25 = int_to_ptr.vmem [resolvable:$true] %s35_s25  ;;  %s783_s27 = int_to_ptr.vmem [resolvable:$true] %s21_s27 }
   0x3   :  { %s666_s30 = scalar_lea.hbm %s903_s3, 1024 }
   0x4   :  { %p667_p0 = scmp.ne.s32.totalorder %s903_s3, %s666_s30  ;;  %p670_p1 = scmp.lt.u32.totalorder %s666_s30, %s903_s3 }
   0x6   :  { %p672_p2 = pnand %p670_p1, %p667_p0 }
   0x8   :  { %675 = shalt.err (!%p672_p2)
}
   0x9   :  { %s676_s12 = scalar_lea.vmem %s36_s25, 1024  ;;  %p681_p4 = scmp.lt.s32.totalorder %s36_s25, %s36_s25 }
   0xa   :  { %p677_p3 = scmp.ne.s32.totalorder %s36_s25, %s676_s12  ;;  %p682_p5 = scmp.lt.s32.totalorder %s676_s12, %s676_s12 }
   0xc   :  { %p683_p6 = por %p682_p5, %p681_p4 }
   0xe   :  { %p684_p7 = pnand %p683_p6, %p677_p3 }
  0x10   :  { %687 = shalt.err (!%p684_p7)
}
  0x11   :  { %s738_s13 = smov 64   ;;  %s739_s14 = smov 4  }
  0x12   :  { %41 = dma.hbm_to_vmem [thread:$0]  %s903_s3, 1024, %s36_s25, [#allocation5], %s738_s13, %s738_s13, %s739_s14  }
  0x13   :  { %s688_s19 = scalar_lea.hbm %s901_s1, 1024 }
  0x14   :  { %p689_p8 = scmp.ne.s32.totalorder %s901_s1, %s688_s19  ;;  %p692_p9 = scmp.lt.u32.totalorder %s688_s19, %s901_s1 }
  0x16   :  { %p694_p10 = pnand %p692_p9, %p689_p8 }
  0x18   :  { %697 = shalt.err (!%p694_p10)
}
  0x19   :  { %s698_s24 = scalar_lea.vmem %s783_s27, 1024  ;;  %p703_p12 = scmp.lt.s32.totalorder %s783_s27, %s783_s27 }
  0x1a   :  { %p699_p11 = scmp.ne.s32.totalorder %s783_s27, %s698_s24  ;;  %p704_p13 = scmp.lt.s32.totalorder %s698_s24, %s698_s24 }
  0x1c   :  { %p705_p0 = por %p704_p13, %p703_p12 }
  0x1e   :  { %p706_p1 = pnand %p705_p0, %p699_p11 }
  0x20   :  { %709 = shalt.err (!%p706_p1)
}
  0x21   :  { %27 = dma.hbm_to_vmem [thread:$0]  %s901_s1, 1024, %s783_s27, [#allocation3], %s738_s13, %s738_s13, %s739_s14  }
  0x22   :  { %s740_s26 = smov [#allocation6]   ;;  %s710_s8 = scalar_lea.hbm %s905_s5, 1024 }
  0x23   :  { %s49_s28 = sshll.u32 %s740_s26, 4  ;;  %p711_p2 = scmp.ne.s32.totalorder %s905_s5, %s710_s8  ;;  %s50_s28 = int_to_ptr.vmem [resolvable:$true] %s49_s28 }
  0x24   :  { %p714_p3 = scmp.lt.u32.totalorder %s710_s8, %s905_s5 }
  0x26   :  { %p716_p4 = pnand %p714_p3, %p711_p2 }
  0x28   :  { %719 = shalt.err (!%p716_p4)
}
  0x29   :  { %s720_s15 = scalar_lea.vmem %s50_s28, 1024  ;;  %p725_p6 = scmp.lt.s32.totalorder %s50_s28, %s50_s28 }
  0x2a   :  { %p721_p5 = scmp.ne.s32.totalorder %s50_s28, %s720_s15  ;;  %p726_p7 = scmp.lt.s32.totalorder %s720_s15, %s720_s15 }
  0x2c   :  { %p727_p8 = por %p726_p7, %p725_p6 }
  0x2e   :  { %p728_p9 = pnand %p727_p8, %p721_p5 }
  0x30   :  { %731 = shalt.err (!%p728_p9)
}
  0x31   :  { %55 = dma.hbm_to_vmem [thread:$0]  %s905_s5, 1024, %s50_s28, [#allocation5], %s738_s13, %s738_s13, %s739_s14  }
  0x32   :  { %732 = dma.done.wait [#allocation3], 1024  }
  0x33   :  { %733 = vsyncadd [#allocation3], 4294966272 }
  0x34   :  { %734 = dma.done.wait [#allocation5], 2048  }
  0x35   :  { %735 = vsyncadd [#allocation5], 4294965248  ;;  %v741_v0 = vmov 0.0   ;;  %vm742_vm0 = vmmov 0   ;;  %v637_v1 = vld [vmem:[#allocation2] sm:$0xff]   ;;  %v638_v2 = vld [vmem:[#allocation2 + $0x8] sm:$0xff]   ;;  %v92_v18 = vlaneseq }
  0x36   :  { %570 = vmatprep.subr.bf16.mxu0 %v741_v0  ;;  %586 = vmatprep.mubr.msk.bf16.mxu0 %vm742_vm0, %v741_v0  ;;  %v639_v3 = vld [vmem:[#allocation2 + $0x10] sm:$0xff]   ;;  %v640_v4 = vld [vmem:[#allocation2 + $0x18] sm:$0xff]   ;;  %v641_v5 = vld [vmem:[#allocation2 + $0x20] sm:$0xff]  }
  0x37   :  { %590 = vmatprep.subr.bf16.mxu1 %v741_v0  ;;  %606 = vmatprep.mubr.msk.bf16.mxu1 %vm742_vm0, %v741_v0  ;;  %v642_v6 = vld [vmem:[#allocation2 + $0x28] sm:$0xff]   ;;  %v643_v7 = vld [vmem:[#allocation2 + $0x30] sm:$0xff]   ;;  %v644_v8 = vld [vmem:[#allocation2 + $0x38] sm:$0xff]   ;;  %v861_v19 = vshrl.u32 %v92_v18, 7 }
  0x38   :  { %571 = vmatpush3.bf16.msra.mxu0 %v637_v1  ;;  %v645_v9 = vld [vmem:[%s900_s0] sm:$0xff]   ;;  %v647_v11 = vld [vmem:[#allocation4 + $0x8] sm:$0xff]   ;;  %v648_v12 = vld [vmem:[#allocation4 + $0x10] sm:$0xff]  }
  0x39   :  { %572 = vmatprep.subr.bf16.mxu0 %v741_v0  ;;  %v646_v10 = vld [vmem:[#allocation4] sm:$0xff]   ;;  %v649_v13 = vld [vmem:[#allocation4 + $0x18] sm:$0xff]   ;;  %v651_v15 = vld [vmem:[#allocation4 + $0x28] sm:$0xff]   ;;  %v94_v20 = vsub.s32 0, %v861_v19  ;;  %v230_v49 = vsub.s32 1, %v861_v19  ;;  %v236_v57 = vsub.s32 2, %v861_v19 }
  0x3a   :  { %591 = vmatpush3.bf16.msra.mxu1 %v646_v10  ;;  %v650_v14 = vld [vmem:[#allocation4 + $0x20] sm:$0xff]   ;;  %v652_v16 = vld [vmem:[#allocation4 + $0x30] sm:$0xff]   ;;  %v653_v17 = vld [vmem:[#allocation4 + $0x38] sm:$0xff]  }
  0x3b   :  { %592 = vmatprep.subr.bf16.mxu1 %v741_v0  ;;  %v75_v21 = vld [vmem:[%s902_s2] sm:$0x7] }
  0x3c   :  { %573 = vmatpush3.bf16.msra.mxu0 %v638_v2  ;;  %v95_v22 = vrot.slane %v75_v21, %v94_v20  ;;  %v654_v1 = vld [vmem:[#allocation6] sm:$0xff]   ;;  %v655_v2 = vld [vmem:[#allocation6 + $0x8] sm:$0xff]  }
  0x3d   :  { %574 = vmatprep.subr.bf16.mxu0 %v741_v0 }
  0x3e   :  { %593 = vmatpush3.bf16.msra.mxu1 %v647_v11 }
  0x3f   :  { %594 = vmatprep.subr.bf16.mxu1 %v741_v0 }
  0x40   :  { %575 = vmatpush3.bf16.msra.mxu0 %v639_v3  ;;  %v656_v3 = vld [vmem:[#allocation6 + $0x10] sm:$0xff]  }
  0x41   :  { %576 = vmatprep.subr.bf16.mxu0 %v741_v0 }
  0x42   :  { %595 = vmatpush3.bf16.msra.mxu1 %v648_v12 }
  0x43   :  { %596 = vmatprep.subr.bf16.mxu1 %v741_v0 }
  0x44   :  { %577 = vmatpush3.bf16.msra.mxu0 %v640_v4  ;;  %v657_v4 = vld [vmem:[#allocation6 + $0x18] sm:$0xff]  }
  0x45   :  { %578 = vmatprep.subr.bf16.mxu0 %v741_v0 }
  0x46   :  { %597 = vmatpush3.bf16.msra.mxu1 %v649_v13 }
  0x47   :  { %598 = vmatprep.subr.bf16.mxu1 %v741_v0 }
  0x48   :  { %579 = vmatpush3.bf16.msra.mxu0 %v641_v5  ;;  %v658_v5 = vld [vmem:[#allocation6 + $0x20] sm:$0xff]  }
  0x49   :  { %580 = vmatprep.subr.bf16.mxu0 %v741_v0 }
  0x4a   :  { %599 = vmatpush3.bf16.msra.mxu1 %v650_v14 }
  0x4b   :  { %600 = vmatprep.subr.bf16.mxu1 %v741_v0 }
  0x4c   :  { %581 = vmatpush3.bf16.msra.mxu0 %v642_v6  ;;  %v659_v6 = vld [vmem:[#allocation6 + $0x28] sm:$0xff]  }
  0x4d   :  { %582 = vmatprep.subr.bf16.mxu0 %v741_v0 }
  0x4e   :  { %601 = vmatpush3.bf16.msra.mxu1 %v651_v15 }
  0x4f   :  { %602 = vmatprep.subr.bf16.mxu1 %v741_v0 }
  0x50   :  { %583 = vmatpush3.bf16.msra.mxu0 %v643_v7  ;;  %v660_v7 = vld [vmem:[#allocation6 + $0x30] sm:$0xff]  }
  0x51   :  { %584 = vmatprep.subr.bf16.mxu0 %v741_v0 }
  0x52   :  { %603 = vmatpush3.bf16.msra.mxu1 %v652_v16 }
  0x53   :  { %604 = vmatprep.subr.bf16.mxu1 %v741_v0 }
  0x54   :  { %585 = vmatpush3.bf16.msra.mxu0 %v644_v8  ;;  %v661_v8 = vld [vmem:[#allocation6 + $0x38] sm:$0xff]  }
  0x55   :  { %610 = vmatprep.subr.bf16.mxu0 %v741_v0 }
  0x56   :  { %605 = vmatpush3.bf16.msra.mxu1 %v653_v17 }
  0x57   :  { %587 = vmatmul.mubr.bf16.vlgmr.msra.gmra.mrb[0].mxu0 %v645_v9  ;;  %v240_v9 = vld [vmem:[%s904_s4] sm:$0x7] }
  0x58   :  { %626 = vmatprep.mubr.msk.bf16.mxu0 %vm742_vm0, %v741_v0  ;;  %611 = vmatpush3.bf16.msra.mxu0 %v654_v1  ;;  %v261_v10 = vrot.slane %v240_v9, %v94_v20 }
  0x59   :  { %612 = vmatprep.subr.bf16.mxu0 %v741_v0 }
  0x5c   :  { %613 = vmatpush3.bf16.msra.mxu0 %v655_v2 }
  0x5d   :  { %614 = vmatprep.subr.bf16.mxu0 %v741_v0 }
  0x60   :  { %615 = vmatpush3.bf16.msra.mxu0 %v656_v3 }
  0x61   :  { %616 = vmatprep.subr.bf16.mxu0 %v741_v0 }
  0x64   :  { %617 = vmatpush3.bf16.msra.mxu0 %v657_v4 }
  0x65   :  { %618 = vmatprep.subr.bf16.mxu0 %v741_v0 }
  0x68   :  { %619 = vmatpush3.bf16.msra.mxu0 %v658_v5 }
  0x69   :  { %620 = vmatprep.subr.bf16.mxu0 %v741_v0 }
  0x6c   :  { %621 = vmatpush3.bf16.msra.mxu0 %v659_v6 }
  0x6d   :  { %622 = vmatprep.subr.bf16.mxu0 %v741_v0 }
  0x70   :  { %623 = vmatpush3.bf16.msra.mxu0 %v660_v7 }
  0x71   :  { %624 = vmatprep.subr.bf16.mxu0 %v741_v0 }
  0x74   :  { %625 = vmatpush3.bf16.msra.mxu0 %v661_v8 }
 0x12a   :  { %v184_v23 = vpop.f32.mrb[0].mxu0 }
 0x12b   :  { %v185_v24 = vadd.f32 %v184_v23, %v95_v22  ;;  %v588_v25 = vpop.f32.mrb[1].mxu0 }
 0x12c   :  { %v187_v26 = vpop.f32.mrb[2].mxu0 }
 0x12d   :  { %v191_v27 = vmax.f32 %v185_v24, 0.0  ;;  %v589_v28 = vpop.f32.mrb[3].mxu0  ;;  %v188_v48 = vadd.f32 %v187_v26, %v95_v22 }
 0x12f   :  { %v200_v29 = vrot.slane %v191_v27, 4  ;;  %v207_v30 = vmul.f32 %v191_v27, %v191_v27  ;;  %v192_v53 = vmax.f32 %v188_v48, 0.0 }
 0x131   :  { %v201_v31 = vadd.f32 %v200_v29, %v191_v27  ;;  %v210_v32 = vrot.slane %v207_v30, 4 }
 0x133   :  { %v202_v33 = vrot.slane %v201_v31, 2  ;;  %v211_v34 = vadd.f32 %v210_v32, %v207_v30 }
 0x135   :  { %v203_v35 = vadd.f32 %v202_v33, %v201_v31  ;;  %v212_v36 = vrot.slane %v211_v34, 2 }
 0x137   :  { %v204_v37 = vrot.slane %v203_v35, 1  ;;  %v213_v38 = vadd.f32 %v212_v36, %v211_v34 }
 0x139   :  { %v205_v39 = vadd.f32 %v204_v37, %v203_v35  ;;  %v214_v40 = vrot.slane %v213_v38, 1 }
 0x13b   :  { %v206_v41 = vmul.f32 0.125, %v205_v39  ;;  %v215_v42 = vadd.f32 %v214_v40, %v213_v38 }
 0x13d   :  { %v216_v43 = vmul.f32 0.125, %v215_v42  ;;  %v217_v44 = vmul.f32 %v206_v41, %v206_v41 }
 0x13f   :  { %v218_v45 = vsub.f32 %v216_v43, %v217_v44 }
 0x141   :  { %v219_v46 = vmax.f32 %v218_v45, 0.0 }
 0x143   :  { %v220_v47 = vadd.f32 1e-05, %v219_v46 }
 0x145   :  { %662 = vrsqrt.f32 %v220_v47 }
 0x14f   :  { %v663_v50 = vpop.eup %662 }
 0x150   :  { %v222_v51 = vmul.f32 %v663_v50, %v75_v21 }
 0x152   :  { %v223_v52 = vmul.f32 %v222_v51, %v206_v41  ;;  %v231_v54 = vrot.slane %v222_v51, %v230_v49  ;;  %v534_v51 = vld [vmem:[%s906_s6] ss:$0 sm:$0xff] }
 0x154   :  { %v225_v55 = vrot.slane %v223_v52, 7  ;;  %v233_v56 = vmul.f32 %v231_v54, %v192_v53  ;;  %v232_v59 = vmul.f32 %v231_v54, %v191_v27 }
 0x156   :  { %v227_v58 = vsub.f32 %v75_v21, %v225_v55 }
 0x158   :  { %v237_v60 = vrot.slane %v227_v58, %v236_v57 }
 0x15a   :  { %v239_v61 = vadd.f32 %v237_v60, %v233_v56  ;;  %v238_v62 = vadd.f32 %v237_v60, %v232_v59 }
 0x15c   :  { %v241_v63 = vpack.c.bf16 %v239_v61, %v238_v62 }
 0x15e   :  { %607 = vmatmul.mubr.bf16.vlgmr.msra.gmra.mrb[0].mxu1 %v241_v63 }
 0x231   :  { %v344_v11 = vpop.f32.mrb[0].mxu1 }
 0x232   :  { %v345_v12 = vadd.f32 %v344_v11, %v261_v10  ;;  %v608_v13 = vpop.f32.mrb[1].mxu1 }
 0x233   :  { %v347_v14 = vpop.f32.mrb[2].mxu1 }
 0x234   :  { %v351_v15 = vmax.f32 %v345_v12, 0.0  ;;  %v609_v16 = vpop.f32.mrb[3].mxu1  ;;  %v348_v36 = vadd.f32 %v347_v14, %v261_v10 }
 0x236   :  { %v356_v17 = vrot.slane %v351_v15, 4  ;;  %v363_v18 = vmul.f32 %v351_v15, %v351_v15  ;;  %v352_v40 = vmax.f32 %v348_v36, 0.0 }
 0x238   :  { %v357_v21 = vadd.f32 %v356_v17, %v351_v15  ;;  %v366_v22 = vrot.slane %v363_v18, 4 }
 0x23a   :  { %v358_v0 = vrot.slane %v357_v21, 2  ;;  %v367_v23 = vadd.f32 %v366_v22, %v363_v18 }
 0x23c   :  { %v359_v24 = vadd.f32 %v358_v0, %v357_v21  ;;  %v368_v25 = vrot.slane %v367_v23, 2 }
 0x23e   :  { %v360_v26 = vrot.slane %v359_v24, 1  ;;  %v369_v27 = vadd.f32 %v368_v25, %v367_v23 }
 0x240   :  { %v361_v28 = vadd.f32 %v360_v26, %v359_v24  ;;  %v370_v29 = vrot.slane %v369_v27, 1 }
 0x242   :  { %v362_v30 = vmul.f32 0.125, %v361_v28  ;;  %v371_v20 = vadd.f32 %v370_v29, %v369_v27 }
 0x244   :  { %v372_v31 = vmul.f32 0.125, %v371_v20  ;;  %v373_v32 = vmul.f32 %v362_v30, %v362_v30 }
 0x246   :  { %v374_v33 = vsub.f32 %v372_v31, %v373_v32 }
 0x248   :  { %v375_v34 = vmax.f32 %v374_v33, 0.0 }
 0x24a   :  { %v376_v35 = vadd.f32 1e-05, %v375_v34 }
 0x24c   :  { %664 = vrsqrt.f32 %v376_v35 }
 0x256   :  { %v665_v37 = vpop.eup %664 }
 0x257   :  { %v378_v38 = vmul.f32 %v665_v37, %v240_v9 }
 0x259   :  { %v379_v39 = vmul.f32 %v378_v38, %v362_v30  ;;  %v387_v41 = vrot.slane %v378_v38, %v230_v49 }
 0x25b   :  { %v381_v42 = vrot.slane %v379_v39, 7  ;;  %v389_v43 = vmul.f32 %v387_v41, %v352_v40  ;;  %v388_v45 = vmul.f32 %v387_v41, %v351_v15 }
 0x25d   :  { %v383_v44 = vsub.f32 %v240_v9, %v381_v42 }
 0x25f   :  { %v393_v46 = vrot.slane %v383_v44, %v236_v57 }
 0x261   :  { %v394_v47 = vadd.f32 %v393_v46, %v388_v45  ;;  %v395_v48 = vadd.f32 %v393_v46, %v389_v43 }
 0x263   :  { %v396_v50 = vpack.c.bf16 %v395_v48, %v394_v47 }
 0x265   :  { %627 = vmatmul.mubr.bf16.vlgmr.msra.gmra.mrb[4].mxu0 %v396_v50 }
 0x338   :  { %v502_v52 = vpop.f32.mrb[4].mxu0 }
 0x339   :  { %v503_v53 = vadd.f32 %v534_v51, %v502_v52  ;;  %v628_v54 = vpop.f32.mrb[5].mxu0 }
 0x33a   :  { %v505_v55 = vpop.f32.mrb[6].mxu0 }
 0x33b   :  { %509 = vst [vmem:[%s907_s7] sm:$0xff] %v503_v53  ;;  %v506_v49 = vadd.f32 %v534_v51, %v505_v55  ;;  %v629_v56 = vpop.f32.mrb[7].mxu0 }
 0x33d   :  { %510 = vst [vmem:[%s907_s7 + $0x8] sm:$0xff] %v506_v49 }
 0x33e   :  { %515 = vsyncpa [#allocation3], 1 }
 0x33f   :  { %516 = vsyncpa [#allocation5], 1 }

</bundles_post_ra>
